<compile_context>
chip_gen: v7x
topology: tpu7x:2x2x1
jax: 0.10.0
libtpu: 0.0.40
codegen_flags: <defaults>
</compile_context>

<pallas_src>
import functools

import jax
import jax.numpy as jnp
from jax.experimental import pallas as pl
from jax.experimental.pallas import tpu as pltpu  # noqa: F401  (TPU backend)


def _fused_conv_relu_conv_kernel(x_ref, w1_ref, w2_ref, o_ref, *,
                                 N, W, KH, KW, Cmid, Cout, L1, L2):
    """Fused Conv(3->3,k3) -> ReLU -> Conv(3->5,k3) on flat-spatial layout.

    x_ref:  (N, Cin, H*W)      f32 VMEM  (channel-flat image, lane-dense)
    w1_ref: (KH*KW*Cmid, Cin)  f32 VMEM  (tap-stacked channel-mix weights)
    w2_ref: (KH*KW*Cout, Cmid) f32 VMEM
    o_ref:  (N, Cout, L2)      f32 VMEM  (valid flat prefix of conv2 output)
    """
    w1 = w1_ref[...]
    w2 = w2_ref[...]
    taps = [(kh, kw) for kh in range(KH) for kw in range(KW)]

    for n in range(N):  # N is tiny and static -> fully unrolled
        x_n = x_ref[n]                                        # (Cin, H*W)

        # conv1: channel mixing for all 9 taps in a single MXU matmul.
        g1 = jnp.dot(w1, x_n,
                     preferred_element_type=jnp.float32)      # (9*Cmid, H*W)
        # Tap accumulation = statically shifted slice-adds on the lane axis.
        h = None
        for t, (kh, kw) in enumerate(taps):
            s = kh * W + kw
            blk = g1[t * Cmid:(t + 1) * Cmid, s:s + L1]       # (Cmid, L1)
            h = blk if h is None else h + blk
        h = jnp.maximum(h, 0.0)                               # ReLU (VPU)

        # conv2: same trick on the intermediate (kept entirely on-chip).
        g2 = jnp.dot(w2, h,
                     preferred_element_type=jnp.float32)      # (9*Cout, L1)
        o = None
        for t, (kh, kw) in enumerate(taps):
            s = kh * W + kw
            blk = g2[t * Cout:(t + 1) * Cout, s:s + L2]       # (Cout, L2)
            o = blk if o is None else o + blk

        o_ref[n] = o.astype(o_ref.dtype)                      # lane-dense store


def model_with_submodules_forward(x_nchw, w1_oihw, w2_oihw):
    """ModelWithSubModules.forward.

    x_nchw:  (N, 3, H, W) f32;  w1_oihw: (3, 3, 3, 3);  w2_oihw: (5, 3, 3, 3)
    returns: (N, 5, H-4, W-4) f32 (NCHW), matching PyTorch.
    """
    N, Cin, H, W = x_nchw.shape
    Cmid, Cin1, KH, KW = w1_oihw.shape
    Cout, Cmid2, KH2, KW2 = w2_oihw.shape
    assert Cin1 == Cin and Cmid2 == Cmid and (KH2, KW2) == (KH, KW)

    Ho1, Wo1 = H - KH + 1, W - KW + 1          # conv1 valid output
    Ho2, Wo2 = Ho1 - KH + 1, Wo1 - KW + 1      # conv2 valid output
    s_max = (KH - 1) * W + (KW - 1)            # largest flat tap shift
    L1 = H * W - s_max                         # flat columns of h computed
    L2 = L1 - s_max                            # flat columns of final output
    # L2 == (Ho2 - 1) * W + Wo2: exactly covers every valid output position.

    # Free row-major reshape (bitcast): flat spatial on the lane axis.
    x_flat = x_nchw.reshape(N, Cin, H * W)
    # Tiny one-time weight rearrangement (tap-major stacking).
    w1m = jnp.transpose(w1_oihw, (2, 3, 0, 1)).reshape(KH * KW * Cmid, Cin)
    w2m = jnp.transpose(w2_oihw, (2, 3, 0, 1)).reshape(KH * KW * Cout, Cmid)

    kernel = functools.partial(
        _fused_conv_relu_conv_kernel,
        N=N, W=W, KH=KH, KW=KW, Cmid=Cmid, Cout=Cout, L1=L1, L2=L2)

    out_flat = pl.pallas_call(
        kernel,
        out_shape=jax.ShapeDtypeStruct((N, Cout, L2), jnp.float32),
        in_specs=[
            pl.BlockSpec((N, Cin, H * W), lambda: (0, 0, 0)),
            pl.BlockSpec((KH * KW * Cmid, Cin), lambda: (0, 0)),
            pl.BlockSpec((KH * KW * Cout, Cmid), lambda: (0, 0)),
        ],
        out_specs=pl.BlockSpec((N, Cout, L2), lambda: (0, 0, 0)),
    )(x_flat, w1m, w2m)

    # Un-flatten: pad the ragged tail, split rows, crop the horizontal margin.
    out = jnp.pad(out_flat, ((0, 0), (0, 0), (0, Ho2 * W - L2)))
    out = out.reshape(N, Cout, Ho2, W)[:, :, :, :Wo2]
    return out


def _reference_forward(x_nchw, w1_oihw, w2_oihw):
    """Pure-JAX reference (lax conv) for verification."""
    dn = ("NCHW", "OIHW", "NCHW")
    hi = jax.lax.Precision.HIGHEST
    h = jax.lax.conv_general_dilated(x_nchw, w1_oihw, (1, 1), "VALID",
                                     dimension_numbers=dn, precision=hi)
    h = jnp.maximum(h, 0.0)
    return jax.lax.conv_general_dilated(h, w2_oihw, (1, 1), "VALID",
                                        dimension_numbers=dn, precision=hi)


if __name__ == "__main__":
    key = jax.random.PRNGKey(0)
    kx, k1, k2 = jax.random.split(key, 3)

    # Shapes implied by the module: Conv2d(3,3,3) -> ReLU -> Conv2d(3,5,3).
    N, Cin, H, W = 2, 3, 16, 16
    x = jax.random.normal(kx, (N, Cin, H, W), dtype=jnp.float32)
    w1 = jax.random.uniform(k1, (3, 3, 3, 3), jnp.float32, -0.2, 0.2)
    w2 = jax.random.uniform(k2, (5, 3, 3, 3), jnp.float32, -0.2, 0.2)

    out = jax.jit(model_with_submodules_forward)(x, w1, w2)
    out = jax.block_until_ready(out)

    ref = _reference_forward(x, w1, w2)
    assert out.shape == (N, 5, H - 4, W - 4), out.shape
    assert jnp.allclose(out, ref, atol=2e-2, rtol=2e-2), "mismatch vs reference"

    print("KERNEL_OK")
</pallas_src>

<mosaic_0001>
module attributes {stable_mosaic.version = 11 : i64} {
  func.func @_fused_conv_relu_conv_kernel(%arg0: memref<2x3x256xf32, #tpu.memory_space<vmem>>, %arg1: memref<27x3xf32, #tpu.memory_space<vmem>>, %arg2: memref<45x3xf32, #tpu.memory_space<vmem>>, %arg3: memref<2x5x188xf32, #tpu.memory_space<vmem>>) attributes {dimension_semantics = [], scalar_prefetch = 0 : i64, scratch_operands = 0 : i64, tpu.core_type = #tpu.core_type<tc>} {
    %c0 = arith.constant 0 : index
    %c0_0 = arith.constant 0 : index
    %0 = vector.load %arg1[%c0, %c0_0] : memref<27x3xf32, #tpu.memory_space<vmem>>, vector<27x3xf32>
    %c0_1 = arith.constant 0 : index
    %c0_2 = arith.constant 0 : index
    %1 = vector.load %arg2[%c0_1, %c0_2] : memref<45x3xf32, #tpu.memory_space<vmem>>, vector<45x3xf32>
    %c0_3 = arith.constant 0 : index
    %c0_4 = arith.constant 0 : index
    %c0_5 = arith.constant 0 : index
    %2 = vector.load %arg0[%c0_3, %c0_4, %c0_5] : memref<2x3x256xf32, #tpu.memory_space<vmem>>, vector<1x3x256xf32>
    %3 = vector.shape_cast %2 : vector<1x3x256xf32> to vector<3x256xf32>
    %cst = arith.constant dense<0.000000e+00> : vector<27x256xf32>
    %4 = tpu.matmul %0, %3, %cst {dimension_numbers = #tpu.dot_dimension_numbers<[1], [0], [0], [1], [0, 0, 1, 1], [], []>} : vector<27x3xf32>, vector<3x256xf32>, vector<27x256xf32> -> vector<27x256xf32>
    %5 = vector.extract_strided_slice %4 {offsets = [0, 0], sizes = [3, 222], strides = [1, 1]} : vector<27x256xf32> to vector<3x222xf32>
    %6 = vector.extract_strided_slice %4 {offsets = [3, 1], sizes = [3, 222], strides = [1, 1]} : vector<27x256xf32> to vector<3x222xf32>
    %7 = arith.addf %5, %6 : vector<3x222xf32>
    %8 = vector.extract_strided_slice %4 {offsets = [6, 2], sizes = [3, 222], strides = [1, 1]} : vector<27x256xf32> to vector<3x222xf32>
    %9 = arith.addf %7, %8 : vector<3x222xf32>
    %10 = vector.extract_strided_slice %4 {offsets = [9, 16], sizes = [3, 222], strides = [1, 1]} : vector<27x256xf32> to vector<3x222xf32>
    %11 = arith.addf %9, %10 : vector<3x222xf32>
    %12 = vector.extract_strided_slice %4 {offsets = [12, 17], sizes = [3, 222], strides = [1, 1]} : vector<27x256xf32> to vector<3x222xf32>
    %13 = arith.addf %11, %12 : vector<3x222xf32>
    %14 = vector.extract_strided_slice %4 {offsets = [15, 18], sizes = [3, 222], strides = [1, 1]} : vector<27x256xf32> to vector<3x222xf32>
    %15 = arith.addf %13, %14 : vector<3x222xf32>
    %16 = vector.extract_strided_slice %4 {offsets = [18, 32], sizes = [3, 222], strides = [1, 1]} : vector<27x256xf32> to vector<3x222xf32>
    %17 = arith.addf %15, %16 : vector<3x222xf32>
    %18 = vector.extract_strided_slice %4 {offsets = [21, 33], sizes = [3, 222], strides = [1, 1]} : vector<27x256xf32> to vector<3x222xf32>
    %19 = arith.addf %17, %18 : vector<3x222xf32>
    %20 = vector.extract_strided_slice %4 {offsets = [24, 34], sizes = [3, 222], strides = [1, 1]} : vector<27x256xf32> to vector<3x222xf32>
    %21 = arith.addf %19, %20 : vector<3x222xf32>
    %cst_6 = arith.constant 0.000000e+00 : f32
    %22 = vector.broadcast %cst_6 : f32 to vector<3x222xf32>
    %23 = arith.maximumf %21, %22 : vector<3x222xf32>
    %cst_7 = arith.constant dense<0.000000e+00> : vector<45x222xf32>
    %24 = tpu.matmul %1, %23, %cst_7 {dimension_numbers = #tpu.dot_dimension_numbers<[1], [0], [0], [1], [0, 0, 1, 1], [], []>} : vector<45x3xf32>, vector<3x222xf32>, vector<45x222xf32> -> vector<45x222xf32>
    %25 = vector.extract_strided_slice %24 {offsets = [0, 0], sizes = [5, 188], strides = [1, 1]} : vector<45x222xf32> to vector<5x188xf32>
    %26 = vector.extract_strided_slice %24 {offsets = [5, 1], sizes = [5, 188], strides = [1, 1]} : vector<45x222xf32> to vector<5x188xf32>
    %27 = arith.addf %25, %26 : vector<5x188xf32>
    %28 = vector.extract_strided_slice %24 {offsets = [10, 2], sizes = [5, 188], strides = [1, 1]} : vector<45x222xf32> to vector<5x188xf32>
    %29 = arith.addf %27, %28 : vector<5x188xf32>
    %30 = vector.extract_strided_slice %24 {offsets = [15, 16], sizes = [5, 188], strides = [1, 1]} : vector<45x222xf32> to vector<5x188xf32>
    %31 = arith.addf %29, %30 : vector<5x188xf32>
    %32 = vector.extract_strided_slice %24 {offsets = [20, 17], sizes = [5, 188], strides = [1, 1]} : vector<45x222xf32> to vector<5x188xf32>
    %33 = arith.addf %31, %32 : vector<5x188xf32>
    %34 = vector.extract_strided_slice %24 {offsets = [25, 18], sizes = [5, 188], strides = [1, 1]} : vector<45x222xf32> to vector<5x188xf32>
    %35 = arith.addf %33, %34 : vector<5x188xf32>
    %36 = vector.extract_strided_slice %24 {offsets = [30, 32], sizes = [5, 188], strides = [1, 1]} : vector<45x222xf32> to vector<5x188xf32>
    %37 = arith.addf %35, %36 : vector<5x188xf32>
    %38 = vector.extract_strided_slice %24 {offsets = [35, 33], sizes = [5, 188], strides = [1, 1]} : vector<45x222xf32> to vector<5x188xf32>
    %39 = arith.addf %37, %38 : vector<5x188xf32>
    %40 = vector.extract_strided_slice %24 {offsets = [40, 34], sizes = [5, 188], strides = [1, 1]} : vector<45x222xf32> to vector<5x188xf32>
    %41 = arith.addf %39, %40 : vector<5x188xf32>
    %c0_8 = arith.constant 0 : index
    %c0_9 = arith.constant 0 : index
    %c0_10 = arith.constant 0 : index
    %42 = vector.load %arg3[%c0_8, %c0_9, %c0_10] : memref<2x5x188xf32, #tpu.memory_space<vmem>>, vector<1x5x188xf32>
    %43 = vector.shape_cast %42 : vector<1x5x188xf32> to vector<5x188xf32>
    %44 = vector.shape_cast %41 : vector<5x188xf32> to vector<1x5x188xf32>
    tpu.vector_store %arg3[%c0_8, %c0_9, %c0_10], %44 {strides = array<i32>} : memref<2x5x188xf32, #tpu.memory_space<vmem>>, vector<1x5x188xf32>,
    %c1 = arith.constant 1 : index
    %c0_11 = arith.constant 0 : index
    %c0_12 = arith.constant 0 : index
    %45 = vector.load %arg0[%c1, %c0_11, %c0_12] : memref<2x3x256xf32, #tpu.memory_space<vmem>>, vector<1x3x256xf32>
    %46 = vector.shape_cast %45 : vector<1x3x256xf32> to vector<3x256xf32>
    %cst_13 = arith.constant dense<0.000000e+00> : vector<27x256xf32>
    %47 = tpu.matmul %0, %46, %cst_13 {dimension_numbers = #tpu.dot_dimension_numbers<[1], [0], [0], [1], [0, 0, 1, 1], [], []>} : vector<27x3xf32>, vector<3x256xf32>, vector<27x256xf32> -> vector<27x256xf32>
    %48 = vector.extract_strided_slice %47 {offsets = [0, 0], sizes = [3, 222], strides = [1, 1]} : vector<27x256xf32> to vector<3x222xf32>
    %49 = vector.extract_strided_slice %47 {offsets = [3, 1], sizes = [3, 222], strides = [1, 1]} : vector<27x256xf32> to vector<3x222xf32>
    %50 = arith.addf %48, %49 : vector<3x222xf32>
    %51 = vector.extract_strided_slice %47 {offsets = [6, 2], sizes = [3, 222], strides = [1, 1]} : vector<27x256xf32> to vector<3x222xf32>
    %52 = arith.addf %50, %51 : vector<3x222xf32>
    %53 = vector.extract_strided_slice %47 {offsets = [9, 16], sizes = [3, 222], strides = [1, 1]} : vector<27x256xf32> to vector<3x222xf32>
    %54 = arith.addf %52, %53 : vector<3x222xf32>
    %55 = vector.extract_strided_slice %47 {offsets = [12, 17], sizes = [3, 222], strides = [1, 1]} : vector<27x256xf32> to vector<3x222xf32>
    %56 = arith.addf %54, %55 : vector<3x222xf32>
    %57 = vector.extract_strided_slice %47 {offsets = [15, 18], sizes = [3, 222], strides = [1, 1]} : vector<27x256xf32> to vector<3x222xf32>
    %58 = arith.addf %56, %57 : vector<3x222xf32>
    %59 = vector.extract_strided_slice %47 {offsets = [18, 32], sizes = [3, 222], strides = [1, 1]} : vector<27x256xf32> to vector<3x222xf32>
    %60 = arith.addf %58, %59 : vector<3x222xf32>
    %61 = vector.extract_strided_slice %47 {offsets = [21, 33], sizes = [3, 222], strides = [1, 1]} : vector<27x256xf32> to vector<3x222xf32>
    %62 = arith.addf %60, %61 : vector<3x222xf32>
    %63 = vector.extract_strided_slice %47 {offsets = [24, 34], sizes = [3, 222], strides = [1, 1]} : vector<27x256xf32> to vector<3x222xf32>
    %64 = arith.addf %62, %63 : vector<3x222xf32>
    %cst_14 = arith.constant 0.000000e+00 : f32
    %65 = vector.broadcast %cst_14 : f32 to vector<3x222xf32>
    %66 = arith.maximumf %64, %65 : vector<3x222xf32>
    %cst_15 = arith.constant dense<0.000000e+00> : vector<45x222xf32>
    %67 = tpu.matmul %1, %66, %cst_15 {dimension_numbers = #tpu.dot_dimension_numbers<[1], [0], [0], [1], [0, 0, 1, 1], [], []>} : vector<45x3xf32>, vector<3x222xf32>, vector<45x222xf32> -> vector<45x222xf32>
    %68 = vector.extract_strided_slice %67 {offsets = [0, 0], sizes = [5, 188], strides = [1, 1]} : vector<45x222xf32> to vector<5x188xf32>
    %69 = vector.extract_strided_slice %67 {offsets = [5, 1], sizes = [5, 188], strides = [1, 1]} : vector<45x222xf32> to vector<5x188xf32>
    %70 = arith.addf %68, %69 : vector<5x188xf32>
    %71 = vector.extract_strided_slice %67 {offsets = [10, 2], sizes = [5, 188], strides = [1, 1]} : vector<45x222xf32> to vector<5x188xf32>
    %72 = arith.addf %70, %71 : vector<5x188xf32>
    %73 = vector.extract_strided_slice %67 {offsets = [15, 16], sizes = [5, 188], strides = [1, 1]} : vector<45x222xf32> to vector<5x188xf32>
    %74 = arith.addf %72, %73 : vector<5x188xf32>
    %75 = vector.extract_strided_slice %67 {offsets = [20, 17], sizes = [5, 188], strides = [1, 1]} : vector<45x222xf32> to vector<5x188xf32>
    %76 = arith.addf %74, %75 : vector<5x188xf32>
    %77 = vector.extract_strided_slice %67 {offsets = [25, 18], sizes = [5, 188], strides = [1, 1]} : vector<45x222xf32> to vector<5x188xf32>
    %78 = arith.addf %76, %77 : vector<5x188xf32>
    %79 = vector.extract_strided_slice %67 {offsets = [30, 32], sizes = [5, 188], strides = [1, 1]} : vector<45x222xf32> to vector<5x188xf32>
    %80 = arith.addf %78, %79 : vector<5x188xf32>
    %81 = vector.extract_strided_slice %67 {offsets = [35, 33], sizes = [5, 188], strides = [1, 1]} : vector<45x222xf32> to vector<5x188xf32>
    %82 = arith.addf %80, %81 : vector<5x188xf32>
    %83 = vector.extract_strided_slice %67 {offsets = [40, 34], sizes = [5, 188], strides = [1, 1]} : vector<45x222xf32> to vector<5x188xf32>
    %84 = arith.addf %82, %83 : vector<5x188xf32>
    %c1_16 = arith.constant 1 : index
    %c0_17 = arith.constant 0 : index
    %c0_18 = arith.constant 0 : index
    %85 = vector.load %arg3[%c1_16, %c0_17, %c0_18] : memref<2x5x188xf32, #tpu.memory_space<vmem>>, vector<1x5x188xf32>
    %86 = vector.shape_cast %85 : vector<1x5x188xf32> to vector<5x188xf32>
    %87 = vector.shape_cast %84 : vector<5x188xf32> to vector<1x5x188xf32>
    tpu.vector_store %arg3[%c1_16, %c0_17, %c0_18], %87 {strides = array<i32>} : memref<2x5x188xf32, #tpu.memory_space<vmem>>, vector<1x5x188xf32>,
    return
  }
}

</mosaic_0001>

<bundles_post_ra>
// kernel: model_with_submodules_forward.1
= control target key start
LH: loop header
LB: loop body
LE: loop exit
PB: predicated region body
PF: predicated region fallthrough
CT: control target
= control target key end

     0   :  { %vm40_vm0 = vcmask 1042432   ;;  %v964_v1 = vmov 0.0   ;;  %vm27_vm1 = vcmask 23552   ;;  %s965_s22 = smov 127   ;;  %vm150_vm2 = vcmask 1041408   ;;  %s967_s23 = smov 112   ;;  %s1323_s0 = inlined_call_operand.vmem [shape: f32[2,3,256], index: 0, kind: input, shape index: {}]   ;;  %s1324_s1 = inlined_call_operand.vmem [shape: f32[27,3], index: 1, kind: input, shape index: {}]   ;;  %s1325_s2 = inlined_call_operand.vmem [shape: f32[45,3], index: 2, kind: input, shape index: {}]   ;;  %s1326_s3 = inlined_call_operand.vmem [shape: f32[2,5,188], index: 3, kind: output, shape index: {}]  }
   0x1   :  { %v24_v0 = vld [vmem:[%s1323_s0] sm:$0x77]  ;;  %109 = vmatprep.mubr.f32.mxu0 %v964_v1  ;;  %348 = vmatprep.mubr.f32.mxu1 %v964_v1  ;;  %v1011_v4 = vld [vmem:[%s1324_s1 + $0x8] sm:$0xff]  ;;  %v1019_v5 = vld [vmem:[%s1324_s1 + $0x10] sm:$0xff]  ;;  %vm193_vm3 = vcmask 1040384   ;;  %s968_s24 = smov 111  }
   0x2   :  { %v26_v2 = vcombine.high %v24_v0, %v24_v0  ;;  %v1001_v3 = vld [vmem:[%s1324_s1] sm:$0xff]  ;;  %v1027_v6 = vld [vmem:[%s1324_s1 + $0x18] sm:$0x7]  ;;  %s966_s1 = smov 126   ;;  %s969_s25 = smov 96   ;;  %vm142_vm4 = vcmask 1039360  }
   0x3   :  { %s970_s26 = smov 110   ;;  %s971_s27 = smov 95   ;;  %vm161_vm5 = vcmask 1031168   ;;  %vm173_vm6 = vcmask 916480   ;;  %vm185_vm7 = vcmask 908288   ;;  %vm204_vm8 = vcmask 900096  }
   0x4   :  { %920 = vmatprep.subr.msk.mxu0 %vm40_vm0, %v26_v2  ;;  %s972_s28 = smov 94   ;;  %vm216_vm9 = vcmask 785408   ;;  %vm228_vm10 = vcmask 777216   ;;  %vm240_vm11 = vcmask 769024   ;;  %vm422_vm12 = vcmask 1043456  }
   0x5   :  { %921 = vmatpush1.msk.msra.mxu0 %vm40_vm0, %v24_v0  ;;  %vm489_vm13 = vcmask 487424  }
   0x6   :  { %922 = vmatmul.mubr.msk.f32.vlgmr.msra.gmra.mrb[0].mxu0 %vm27_vm1, %v1001_v3 }
   0x7   :  { %115 = vmatprep.mubr.f32.mxu0 %v964_v1 }
   0xa   :  { %923 = vmatmul.mubr.msk.f32.gmra.mrb[2].mxu0 %vm27_vm1, %v1011_v4 }
   0xb   :  { %121 = vmatprep.mubr.f32.mxu0 %v964_v1 }
   0xe   :  { %924 = vmatmul.mubr.msk.f32.gmra.mrb[4].mxu0 %vm27_vm1, %v1019_v5 }
   0xf   :  { %127 = vmatprep.mubr.f32.mxu0 %v964_v1 }
  0x12   :  { %925 = vmatmul.mubr.msk.f32.gmra.mrb[6].mxu0 %vm27_vm1, %v1027_v6 }
  0x13   :  { %336 = vmatprep.mubr.f32.mxu0 %v964_v1 }
  0xd9   :  { %v1032_v7 = vpop.f32.mrb[0].mxu0 }
  0xda   :  { %v1034_v8 = vpop.f32.mrb[1].mxu0  ;;  %v136_v9 = vrot.slane %v1032_v7, 3  ;;  %v151_v11 = vrot.slane %v1032_v7, 6 }
  0xdb   :  { %v137_v12 = vrot.slane %v1034_v8, 3  ;;  %v154_v15 = vrot.slane %v1034_v8, 6 }
  0xdc   :  { %138 = vrot.lane.b32.xlu0 %v136_v9, %s965_s22 }
  0xdd   :  { %v117_v10 = vpop.f32.mrb[2].mxu0 }
  0xde   :  { %v119_v13 = vpop.f32.mrb[3].mxu0  ;;  %v152_v14 = vrot.slane %v117_v10, 6  ;;  %v194_v20 = vrot.slane %v117_v10, 7  ;;  %v167_v23 = vrot.slane %v117_v10, 1  ;;  %v179_v30 = vrot.slane %v117_v10, 4 }
  0xdf   :  { %v155_v16 = vrot.slane %v119_v13, 6  ;;  %v197_v24 = vrot.slane %v119_v13, 7  ;;  %v168_v26 = vrot.slane %v119_v13, 1  ;;  %v180_v32 = vrot.slane %v119_v13, 4 }
  0xe0   :  { %140 = vrot.lane.b32.xlu0 %v137_v12, %s965_s22  ;;  %v153_v17 = vsel %vm150_vm2, %v151_v11, %v152_v14 }
  0xe1   :  { %157 = vrot.lane.b32.xlu1 %v153_v17, %s966_s1  ;;  %v123_v18 = vpop.f32.mrb[4].mxu0  ;;  %v156_v19 = vsel %vm150_vm2, %v154_v15, %v155_v16  ;;  %v934_v15 = vld [vmem:[%s1323_s0 + $0x8] sm:$0x77] }
  0xe2   :  { %v195_v21 = vrot.slane %v123_v18, 7  ;;  %v125_v22 = vpop.f32.mrb[5].mxu0  ;;  %v210_v33 = vrot.slane %v123_v18, 2  ;;  %v222_v35 = vrot.slane %v123_v18, 5 }
  0xe3   :  { %v198_v25 = vrot.slane %v125_v22, 7  ;;  %v211_v34 = vrot.slane %v125_v22, 2  ;;  %v223_v36 = vrot.slane %v125_v22, 5  ;;  %v1076_v22 = vld [vmem:[%s1325_s2] sm:$0xff] }
  0xe4   :  { %169 = vrot.lane.b32.xlu0 %v167_v23, %s967_s23  ;;  %v196_v27 = vsel %vm193_vm3, %v194_v20, %v195_v21  ;;  %v494_v20 = vcombine.high %v934_v15, %v934_v15  ;;  %v1081_v23 = vld [vmem:[%s1325_s2 + $0x10] sm:$0xff] }
  0xe5   :  { %171 = vrot.lane.b32.xlu1 %v168_v26, %s967_s23  ;;  %v199_v28 = vsel %vm193_vm3, %v197_v24, %v198_v25  ;;  %v129_v29 = vpop.f32.mrb[6].mxu0  ;;  %v1095_v24 = vld [vmem:[%s1325_s2 + $0x8] sm:$0xff]  ;;  %v1101_v25 = vld [vmem:[%s1325_s2 + $0x18] sm:$0xff]  ;;  %v1114_v26 = vld [vmem:[%s1325_s2 + $0x20] sm:$0xff] }
  0xe6   :  { %v131_v31 = vpop.f32.mrb[7].mxu0 }
  0xe8   :  { %181 = vrot.lane.b32.xlu0 %v179_v30, %s968_s24 }
  0xe9   :  { %183 = vrot.lane.b32.xlu1 %v180_v32, %s968_s24 }
  0xec   :  { %212 = vrot.lane.b32.xlu0 %v210_v33, %s969_s25 }
  0xed   :  { %159 = vrot.lane.b32.xlu1 %v156_v19, %s966_s1 }
  0xf0   :  { %200 = vrot.lane.b32.xlu0 %v196_v27, %s970_s26  ;;  %v1125_v27 = vld [vmem:[%s1325_s2 + $0x28] sm:$0x1f] }
  0xf1   :  { %214 = vrot.lane.b32.xlu1 %v211_v34, %s969_s25 }
  0xf4   :  { %224 = vrot.lane.b32.xlu0 %v222_v35, %s971_s27 }
  0xf5   :  { %202 = vrot.lane.b32.xlu1 %v199_v28, %s970_s26 }
  0xf8   :  { %236 = vrot.lane.b32.xlu0 %v129_v29, %s972_s28 }
  0xf9   :  { %226 = vrot.lane.b32.xlu1 %v223_v36, %s971_s27 }
  0xfd   :  { %238 = vrot.lane.b32.xlu1 %v131_v31, %s972_s28 }
 0x14e   :  { %v139_v37 = vpop.permute.xlu0 %138 }
 0x152   :  { %v141_v38 = vpop.permute.xlu0 %140 }
 0x153   :  { %v158_v39 = vpop.permute.xlu1 %157  ;;  %v143_v44 = vsel %vm142_vm4, %v139_v37, %v141_v38  ;;  %v147_v45 = vadd.f32 %v141_v38, %v1034_v8 }
 0x154   :  { %v146_v47 = vadd.f32 %v143_v44, %v1032_v7 }
 0x156   :  { %v170_v40 = vpop.permute.xlu0 %169 }
 0x157   :  { %v172_v41 = vpop.permute.xlu1 %171 }
 0x158   :  { %v174_v52 = vsel %vm173_vm6, %v170_v40, %v172_v41 }
 0x15a   :  { %v182_v42 = vpop.permute.xlu0 %181 }
 0x15b   :  { %v184_v43 = vpop.permute.xlu1 %183 }
 0x15c   :  { %v186_v57 = vsel %vm185_vm7, %v182_v42, %v184_v43 }
 0x15e   :  { %v213_v46 = vpop.permute.xlu0 %212 }
 0x15f   :  { %v160_v48 = vpop.permute.xlu1 %159 }
 0x160   :  { %v162_v49 = vsel %vm161_vm5, %v158_v39, %v160_v48  ;;  %v166_v50 = vadd.f32 %v160_v48, %v147_v45 }
 0x161   :  { %v165_v51 = vadd.f32 %v162_v49, %v146_v47 }
 0x162   :  { %v178_v53 = vadd.f32 %v172_v41, %v166_v50  ;;  %v201_v55 = vpop.permute.xlu0 %200 }
 0x163   :  { %v177_v54 = vadd.f32 %v174_v52, %v165_v51  ;;  %v215_v56 = vpop.permute.xlu1 %214 }
 0x164   :  { %v190_v58 = vadd.f32 %v184_v43, %v178_v53  ;;  %v217_v2 = vsel %vm216_vm9, %v213_v46, %v215_v56 }
 0x165   :  { %v189_v59 = vadd.f32 %v186_v57, %v177_v54 }
 0x166   :  { %v225_v63 = vpop.permute.xlu0 %224 }
 0x167   :  { %v203_v60 = vpop.permute.xlu1 %202 }
 0x168   :  { %v205_v61 = vsel %vm204_vm8, %v201_v55, %v203_v60  ;;  %v209_v62 = vadd.f32 %v203_v60, %v190_v58 }
 0x169   :  { %v208_v0 = vadd.f32 %v205_v61, %v189_v59 }
 0x16a   :  { %v221_v7 = vadd.f32 %v215_v56, %v209_v62  ;;  %v237_v11 = vpop.permute.xlu0 %236 }
 0x16b   :  { %v220_v8 = vadd.f32 %v217_v2, %v208_v0  ;;  %v227_v9 = vpop.permute.xlu1 %226 }
 0x16c   :  { %v229_v10 = vsel %vm228_vm10, %v225_v63, %v227_v9  ;;  %v233_v12 = vadd.f32 %v227_v9, %v221_v7 }
 0x16d   :  { %v232_v13 = vadd.f32 %v229_v10, %v220_v8 }
 0x16f   :  { %v239_v14 = vpop.permute.xlu1 %238 }
 0x170   :  { %v241_v16 = vsel %vm240_vm11, %v237_v11, %v239_v14  ;;  %v245_v17 = vadd.f32 %v239_v14, %v233_v12 }
 0x171   :  { %v244_v18 = vadd.f32 %v241_v16, %v232_v13 }
 0x172   :  { %v247_v19 = vmax.f32 %v245_v17, 0.0 }
 0x173   :  { %v246_v21 = vmax.f32 %v244_v18, 0.0 }
 0x174   :  { %926 = vmatprep.subr.msk.mxu0 %vm40_vm0, %v247_v19  ;;  %951 = vmatprep.subr.msk.mxu1 %vm40_vm0, %v247_v19 }
 0x175   :  { %927 = vmatpush1.msk.msra.mxu0 %vm40_vm0, %v246_v21  ;;  %952 = vmatpush1.msk.msra.mxu1 %vm40_vm0, %v246_v21 }
 0x176   :  { %928 = vmatmul.mubr.msk.f32.vlgmr.msra.gmra.mrb[8].mxu0 %vm27_vm1, %v1076_v22  ;;  %930 = vmatmul.mubr.msk.f32.vlgmr.msra.gmra.mrb[0].mxu1 %vm27_vm1, %v1081_v23 }
 0x177   :  { %342 = vmatprep.mubr.f32.mxu0 %v964_v1  ;;  %935 = vmatprep.subr.msk.mxu0 %vm40_vm0, %v494_v20 }
 0x178   :  { %936 = vmatpush1.msk.msra.mxu0 %vm40_vm0, %v934_v15  ;;  %354 = vmatprep.mubr.f32.mxu1 %v964_v1 }
 0x17a   :  { %929 = vmatmul.mubr.msk.f32.gmra.mrb[10].mxu0 %vm27_vm1, %v1095_v24  ;;  %931 = vmatmul.mubr.msk.f32.gmra.mrb[2].mxu1 %vm27_vm1, %v1101_v25 }
 0x17b   :  { %563 = vmatprep.mubr.f32.mxu0 %v964_v1  ;;  %360 = vmatprep.mubr.f32.mxu1 %v964_v1 }
 0x17e   :  { %937 = vmatmul.mubr.msk.f32.vlgmr.msra.gmra.mrb[12].mxu0 %vm27_vm1, %v1001_v3  ;;  %932 = vmatmul.mubr.msk.f32.gmra.mrb[4].mxu1 %vm27_vm1, %v1114_v26 }
 0x17f   :  { %569 = vmatprep.mubr.f32.mxu0 %v964_v1  ;;  %366 = vmatprep.mubr.f32.mxu1 %v964_v1 }
 0x182   :  { %938 = vmatmul.mubr.msk.f32.gmra.mrb[14].mxu0 %vm27_vm1, %v1011_v4  ;;  %933 = vmatmul.mubr.msk.f32.gmra.mrb[6].mxu1 %vm27_vm1, %v1125_v27 }
 0x183   :  { %575 = vmatprep.mubr.f32.mxu0 %v964_v1  ;;  %762 = vmatprep.mubr.f32.mxu1 %v964_v1 }
 0x186   :  { %939 = vmatmul.mubr.msk.f32.gmra.mrb[16].mxu0 %vm27_vm1, %v1019_v5 }
 0x187   :  { %581 = vmatprep.mubr.f32.mxu0 %v964_v1 }
 0x18a   :  { %940 = vmatmul.mubr.msk.f32.gmra.mrb[18].mxu0 %vm27_vm1, %v1027_v6 }
 0x249   :  { %v1138_v3 = vpop.f32.mrb[8].mxu0  ;;  %v350_v28 = vpop.f32.mrb[0].mxu1 }
 0x24a   :  { %v1140_v29 = vpop.f32.mrb[9].mxu0  ;;  %v352_v4 = vpop.f32.mrb[1].mxu1  ;;  %v406_v30 = vrot.slane %v350_v28, 7  ;;  %v377_v31 = vrot.slane %v1138_v3, 5  ;;  %v423_v33 = vrot.slane %v350_v28, 4 }
 0x24b   :  { %v409_v34 = vrot.slane %v352_v4, 7  ;;  %v426_v37 = vrot.slane %v352_v4, 4  ;;  %v380_v40 = vrot.slane %v1140_v29, 5 }
 0x24d   :  { %v1143_v32 = vpop.f32.mrb[10].mxu0  ;;  %v1145_v35 = vpop.f32.mrb[2].mxu1 }
 0x24e   :  { %v378_v5 = vrot.slane %v1143_v32, 5  ;;  %v405_v36 = vrot.slane %v1143_v32, 7  ;;  %v1149_v6 = vpop.f32.mrb[11].mxu0  ;;  %v424_v38 = vrot.slane %v1145_v35, 4  ;;  %v1152_v39 = vpop.f32.mrb[3].mxu1  ;;  %v451_v48 = vrot.slane %v1145_v35, 6 }
 0x24f   :  { %v381_v41 = vrot.slane %v1149_v6, 5  ;;  %v408_v42 = vrot.slane %v1149_v6, 7  ;;  %v427_v45 = vrot.slane %v1152_v39, 4  ;;  %v454_v58 = vrot.slane %v1152_v39, 6 }
 0x250   :  { %v379_v43 = vsel %vm40_vm0, %v377_v31, %v378_v5  ;;  %v1159_v44 = vsel %vm193_vm3, %v405_v36, %v406_v30  ;;  %v425_v53 = vsel %vm422_vm12, %v423_v33, %v424_v38  ;;  %v392_v38 = vrot.slane %v1143_v32, 2 }
 0x251   :  { %v1162_v46 = vpop.f32.mrb[12].mxu0  ;;  %v382_v47 = vsel %vm40_vm0, %v380_v40, %v381_v41  ;;  %v1167_v49 = vsel %vm193_vm3, %v408_v42, %v409_v34  ;;  %v1169_v50 = vpop.f32.mrb[4].mxu1  ;;  %v428_v54 = vsel %vm422_vm12, %v426_v37, %v427_v45  ;;  %v393_v40 = vrot.slane %v1149_v6, 2 }
 0x252   :  { %v590_v51 = vrot.slane %v1162_v46, 3  ;;  %v1172_v52 = vpop.f32.mrb[13].mxu0  ;;  %v1176_v55 = vpop.f32.mrb[5].mxu1  ;;  %v452_v57 = vrot.slane %v1169_v50, 6  ;;  %v603_v63 = vrot.slane %v1162_v46, 6  ;;  %v438_v41 = vrot.slane %v1145_v35, 1 }
 0x253   :  { %v591_v56 = vrot.slane %v1172_v52, 3  ;;  %v455_v59 = vrot.slane %v1176_v55, 6  ;;  %v606_v9 = vrot.slane %v1172_v52, 6  ;;  %v439_v42 = vrot.slane %v1152_v39, 1 }
 0x254   :  { %592 = vrot.lane.b32.xlu0 %v590_v51, %s965_s22  ;;  %v453_v61 = vsel %vm150_vm2, %v451_v48, %v452_v57  ;;  %v466_v32 = vrot.slane %v1169_v50, 3  ;;  %v467_v6 = vrot.slane %v1176_v55, 3 }
 0x255   :  { %594 = vrot.lane.b32.xlu1 %v591_v56, %s965_s22  ;;  %v571_v60 = vpop.f32.mrb[14].mxu0  ;;  %v368_v62 = vpop.f32.mrb[6].mxu1  ;;  %v456_v13 = vsel %vm150_vm2, %v454_v58, %v455_v59 }
 0x256   :  { %v604_v0 = vrot.slane %v571_v60, 6  ;;  %v573_v2 = vpop.f32.mrb[15].mxu0  ;;  %v618_v7 = vrot.slane %v571_v60, 1  ;;  %v370_v8 = vpop.f32.mrb[7].mxu1  ;;  %v642_v16 = vrot.slane %v571_v60, 7  ;;  %v629_v19 = vrot.slane %v571_v60, 4 }
 0x257   :  { %v607_v10 = vrot.slane %v573_v2, 6  ;;  %v619_v11 = vrot.slane %v573_v2, 1  ;;  %v645_v20 = vrot.slane %v573_v2, 7  ;;  %v630_v28 = vrot.slane %v573_v2, 4 }
 0x258   :  { %620 = vrot.lane.b32.xlu0 %v618_v7, %s967_s23  ;;  %v605_v12 = vsel %vm150_vm2, %v603_v63, %v604_v0 }
 0x259   :  { %622 = vrot.lane.b32.xlu1 %v619_v11, %s967_s23  ;;  %v577_v14 = vpop.f32.mrb[16].mxu0  ;;  %v608_v15 = vsel %vm150_vm2, %v606_v9, %v607_v10 }
 0x25a   :  { %v643_v17 = vrot.slane %v577_v14, 7  ;;  %v579_v18 = vpop.f32.mrb[17].mxu0  ;;  %v657_v34 = vrot.slane %v577_v14, 2  ;;  %v668_v36 = vrot.slane %v577_v14, 5 }
 0x25b   :  { %v646_v21 = vrot.slane %v579_v18, 7  ;;  %v658_v5 = vrot.slane %v579_v18, 2  ;;  %v669_v37 = vrot.slane %v579_v18, 5 }
 0x25c   :  { %631 = vrot.lane.b32.xlu0 %v629_v19, %s968_s24  ;;  %v644_v4 = vsel %vm193_vm3, %v642_v16, %v643_v17 }
 0x25d   :  { %633 = vrot.lane.b32.xlu1 %v630_v28, %s968_s24  ;;  %v647_v30 = vsel %vm193_vm3, %v645_v20, %v646_v21  ;;  %v583_v31 = vpop.f32.mrb[18].mxu0 }
 0x25e   :  { %v585_v33 = vpop.f32.mrb[19].mxu0 }
 0x260   :  { %609 = vrot.lane.b32.xlu0 %v605_v12, %s966_s1 }
 0x261   :  { %611 = vrot.lane.b32.xlu1 %v608_v15, %s966_s1 }
 0x264   :  { %659 = vrot.lane.b32.xlu0 %v657_v34, %s969_s25 }
 0x265   :  { %661 = vrot.lane.b32.xlu1 %v658_v5, %s969_s25 }
 0x268   :  { %648 = vrot.lane.b32.xlu0 %v644_v4, %s970_s26 }
 0x269   :  { %650 = vrot.lane.b32.xlu1 %v647_v30, %s970_s26 }
 0x26c   :  { %670 = vrot.lane.b32.xlu0 %v668_v36, %s971_s27 }
 0x26d   :  { %672 = vrot.lane.b32.xlu1 %v669_v37, %s971_s27 }
 0x270   :  { %681 = vrot.lane.b32.xlu0 %v583_v31, %s972_s28 }
 0x271   :  { %683 = vrot.lane.b32.xlu1 %v585_v33, %s972_s28 }
 0x274   :  { %383 = vrot.lane.b32.xlu0 %v379_v43, %s965_s22 }
 0x275   :  { %385 = vrot.lane.b32.xlu1 %v382_v47, %s965_s22 }
 0x278   :  { %394 = vrot.lane.b32.xlu0 %v392_v38, %s966_s1 }
 0x279   :  { %396 = vrot.lane.b32.xlu1 %v393_v40, %s966_s1 }
 0x27c   :  { %411 = vrot.lane.b32.xlu0 %v1159_v44, %s967_s23 }
 0x27d   :  { %413 = vrot.lane.b32.xlu1 %v1167_v49, %s967_s23 }
 0x280   :  { %429 = vrot.lane.b32.xlu0 %v425_v53, %s968_s24 }
 0x281   :  { %431 = vrot.lane.b32.xlu1 %v428_v54, %s968_s24 }
 0x284   :  { %440 = vrot.lane.b32.xlu0 %v438_v41, %s970_s26 }
 0x285   :  { %442 = vrot.lane.b32.xlu1 %v439_v42, %s970_s26 }
 0x288   :  { %457 = vrot.lane.b32.xlu0 %v453_v61, %s969_s25 }
 0x289   :  { %459 = vrot.lane.b32.xlu1 %v456_v13, %s969_s25 }
 0x28c   :  { %468 = vrot.lane.b32.xlu0 %v466_v32, %s971_s27 }
 0x28d   :  { %470 = vrot.lane.b32.xlu1 %v467_v6, %s971_s27 }
 0x290   :  { %479 = vrot.lane.b32.xlu0 %v368_v62, %s972_s28 }
 0x291   :  { %481 = vrot.lane.b32.xlu1 %v370_v8, %s972_s28 }
 0x2c6   :  { %v593_v35 = vpop.permute.xlu0 %592 }
 0x2c7   :  { %v595_v39 = vpop.permute.xlu1 %594 }
 0x2c8   :  { %v596_v48 = vsel %vm142_vm4, %v593_v35, %v595_v39  ;;  %v600_v49 = vadd.f32 %v595_v39, %v1172_v52 }
 0x2c9   :  { %v599_v51 = vadd.f32 %v596_v48, %v1162_v46 }
 0x2ca   :  { %v621_v43 = vpop.permute.xlu0 %620 }
 0x2cb   :  { %v623_v44 = vpop.permute.xlu1 %622 }
 0x2cc   :  { %v624_v57 = vsel %vm173_vm6, %v621_v43, %v623_v44 }
 0x2ce   :  { %v632_v45 = vpop.permute.xlu0 %631 }
 0x2cf   :  { %v634_v47 = vpop.permute.xlu1 %633 }
 0x2d0   :  { %v635_v62 = vsel %vm185_vm7, %v632_v45, %v634_v47 }
 0x2d2   :  { %v610_v50 = vpop.permute.xlu0 %609 }
 0x2d3   :  { %v612_v53 = vpop.permute.xlu1 %611 }
 0x2d4   :  { %v613_v54 = vsel %vm161_vm5, %v610_v50, %v612_v53  ;;  %v617_v55 = vadd.f32 %v612_v53, %v600_v49 }
 0x2d5   :  { %v616_v56 = vadd.f32 %v613_v54, %v599_v51 }
 0x2d6   :  { %v628_v58 = vadd.f32 %v623_v44, %v617_v55  ;;  %v660_v59 = vpop.permute.xlu0 %659 }
 0x2d7   :  { %v627_v60 = vadd.f32 %v624_v57, %v616_v56  ;;  %v662_v61 = vpop.permute.xlu1 %661 }
 0x2d8   :  { %v639_v0 = vadd.f32 %v634_v47, %v628_v58  ;;  %v663_v9 = vsel %vm216_vm9, %v660_v59, %v662_v61 }
 0x2d9   :  { %v638_v2 = vadd.f32 %v635_v62, %v627_v60 }
 0x2da   :  { %v649_v63 = vpop.permute.xlu0 %648 }
 0x2db   :  { %v651_v52 = vpop.permute.xlu1 %650 }
 0x2dc   :  { %v652_v7 = vsel %vm204_vm8, %v649_v63, %v651_v52  ;;  %v656_v46 = vadd.f32 %v651_v52, %v639_v0 }
 0x2dd   :  { %v655_v8 = vadd.f32 %v652_v7, %v638_v2 }
 0x2de   :  { %v671_v10 = vpop.permute.xlu0 %670  ;;  %v667_v11 = vadd.f32 %v662_v61, %v656_v46 }
 0x2df   :  { %v666_v12 = vadd.f32 %v663_v9, %v655_v8  ;;  %v673_v13 = vpop.permute.xlu1 %672 }
 0x2e0   :  { %v674_v14 = vsel %vm228_vm10, %v671_v10, %v673_v13  ;;  %v678_v15 = vadd.f32 %v673_v13, %v667_v11 }
 0x2e1   :  { %v677_v17 = vadd.f32 %v674_v14, %v666_v12 }
 0x2e2   :  { %v682_v16 = vpop.permute.xlu0 %681 }
 0x2e3   :  { %v684_v18 = vpop.permute.xlu1 %683 }
 0x2e4   :  { %v685_v19 = vsel %vm240_vm11, %v682_v16, %v684_v18  ;;  %v689_v20 = vadd.f32 %v684_v18, %v678_v15 }
 0x2e5   :  { %v688_v21 = vadd.f32 %v685_v19, %v677_v17 }
 0x2e6   :  { %v691_v28 = vmax.f32 %v689_v20, 0.0  ;;  %v384_v4 = vpop.permute.xlu0 %383 }
 0x2e7   :  { %v690_v30 = vmax.f32 %v688_v21, 0.0  ;;  %v386_v31 = vpop.permute.xlu1 %385 }
 0x2e8   :  { %941 = vmatprep.subr.msk.mxu1 %vm40_vm0, %v691_v28  ;;  %v387_v40 = vsel %vm142_vm4, %v384_v4, %v386_v31 }
 0x2e9   :  { %942 = vmatpush1.msk.msra.mxu1 %vm40_vm0, %v690_v30 }
 0x2ea   :  { %v395_v33 = vpop.permute.xlu0 %394  ;;  %943 = vmatmul.mubr.msk.f32.vlgmr.msra.gmra.mrb[8].mxu1 %vm27_vm1, %v1076_v22  ;;  %v391_v22 = vadd.f32 %v386_v31, %v1140_v29 }
 0x2eb   :  { %v397_v34 = vpop.permute.xlu1 %396  ;;  %768 = vmatprep.mubr.f32.mxu1 %v964_v1 }
 0x2ec   :  { %v398_v41 = vsel %vm161_vm5, %v395_v33, %v397_v34  ;;  %v402_v6 = vadd.f32 %v397_v34, %v391_v22 }
 0x2ee   :  { %v412_v5 = vpop.permute.xlu0 %411  ;;  %944 = vmatmul.mubr.msk.f32.gmra.mrb[10].mxu1 %vm27_vm1, %v1095_v24  ;;  %v390_v24 = vadd.f32 %v387_v40, %v1138_v3 }
 0x2ef   :  { %v414_v36 = vpop.permute.xlu1 %413  ;;  %774 = vmatprep.mubr.f32.mxu1 %v964_v1 }
 0x2f0   :  { %v401_v35 = vadd.f32 %v398_v41, %v390_v24  ;;  %v419_v39 = vadd.f32 %v414_v36, %v402_v6 }
 0x2f2   :  { %v430_v37 = vpop.permute.xlu0 %429  ;;  %945 = vmatmul.mubr.msk.f32.gmra.mrb[12].mxu1 %vm27_vm1, %v1081_v23  ;;  %v415_v23 = vsel %vm173_vm6, %v412_v5, %v414_v36 }
 0x2f3   :  { %v432_v38 = vpop.permute.xlu1 %431  ;;  %780 = vmatprep.mubr.f32.mxu1 %v964_v1  ;;  %v418_v29 = vadd.f32 %v415_v23, %v401_v35 }
 0x2f4   :  { %v433_v43 = vsel %vm185_vm7, %v430_v37, %v432_v38 }
 0x2f5   :  { %v436_v47 = vadd.f32 %v433_v43, %v418_v29 }
 0x2f6   :  { %v441_v42 = vpop.permute.xlu0 %440  ;;  %946 = vmatmul.mubr.msk.f32.gmra.mrb[14].mxu1 %vm27_vm1, %v1101_v25  ;;  %v437_v25 = vadd.f32 %v432_v38, %v419_v39 }
 0x2f7   :  { %v443_v32 = vpop.permute.xlu1 %442  ;;  %786 = vmatprep.mubr.f32.mxu1 %v964_v1 }
 0x2f8   :  { %v444_v3 = vsel %vm204_vm8, %v441_v42, %v443_v32  ;;  %v448_v48 = vadd.f32 %v443_v32, %v437_v25 }
 0x2f9   :  { %v447_v51 = vadd.f32 %v444_v3, %v436_v47 }
 0x2fa   :  { %v458_v44 = vpop.permute.xlu0 %457  ;;  %947 = vmatmul.mubr.msk.f32.gmra.mrb[16].mxu1 %vm27_vm1, %v1114_v26 }
 0x2fb   :  { %v460_v45 = vpop.permute.xlu1 %459  ;;  %792 = vmatprep.mubr.f32.mxu1 %v964_v1 }
 0x2fc   :  { %v461_v49 = vsel %vm216_vm9, %v458_v44, %v460_v45  ;;  %v465_v54 = vadd.f32 %v460_v45, %v448_v48 }
 0x2fd   :  { %v464_v55 = vadd.f32 %v461_v49, %v447_v51 }
 0x2fe   :  { %v469_v50 = vpop.permute.xlu0 %468  ;;  %948 = vmatmul.mubr.msk.f32.gmra.mrb[18].mxu1 %vm27_vm1, %v1125_v27 }
 0x2ff   :  { %v471_v53 = vpop.permute.xlu1 %470 }
 0x300   :  { %v472_v26 = vsel %vm228_vm10, %v469_v50, %v471_v53  ;;  %v476_v56 = vadd.f32 %v471_v53, %v465_v54 }
 0x301   :  { %v475_v1 = vadd.f32 %v472_v26, %v464_v55 }
 0x302   :  { %v480_v57 = vpop.permute.xlu0 %479 }
 0x303   :  { %v482_v58 = vpop.permute.xlu1 %481 }
 0x304   :  { %v483_v59 = vsel %vm240_vm11, %v480_v57, %v482_v58  ;;  %v487_v60 = vadd.f32 %v482_v58, %v476_v56 }
 0x305   :  { %v486_v61 = vadd.f32 %v483_v59, %v475_v1 }
 0x306   :  { %490 = vst.msk [vmem:[%s1326_s3 + $0x8] sm:$0x1f] %vm489_vm13, %v487_v60 }
 0x307   :  { %488 = vst [vmem:[%s1326_s3] sm:$0x1f] %v486_v61 }
 0x3bd   :  { %v1276_v27 = vpop.f32.mrb[8].mxu1 }
 0x3be   :  { %v1278_v62 = vpop.f32.mrb[9].mxu1  ;;  %v803_v0 = vrot.slane %v1276_v27, 5 }
 0x3bf   :  { %v806_v46 = vrot.slane %v1278_v62, 5 }
 0x3c1   :  { %v770_v63 = vpop.f32.mrb[10].mxu1 }
 0x3c2   :  { %v804_v2 = vrot.slane %v770_v63, 5  ;;  %v818_v52 = vrot.slane %v770_v63, 2  ;;  %v772_v7 = vpop.f32.mrb[11].mxu1  ;;  %v831_v13 = vrot.slane %v770_v63, 7 }
 0x3c3   :  { %v807_v8 = vrot.slane %v772_v7, 5  ;;  %v819_v9 = vrot.slane %v772_v7, 2  ;;  %v834_v16 = vrot.slane %v772_v7, 7 }
 0x3c4   :  { %820 = vrot.lane.b32.xlu0 %v818_v52, %s966_s1  ;;  %v805_v10 = vsel %vm40_vm0, %v803_v0, %v804_v2 }
 0x3c5   :  { %822 = vrot.lane.b32.xlu1 %v819_v9, %s966_s1  ;;  %v776_v11 = vpop.f32.mrb[12].mxu1  ;;  %v808_v12 = vsel %vm40_vm0, %v806_v46, %v807_v8 }
 0x3c6   :  { %v832_v14 = vrot.slane %v776_v11, 7  ;;  %v778_v15 = vpop.f32.mrb[13].mxu1  ;;  %v848_v18 = vrot.slane %v776_v11, 4 }
 0x3c7   :  { %v835_v17 = vrot.slane %v778_v15, 7  ;;  %v851_v30 = vrot.slane %v778_v15, 4 }
 0x3c8   :  { %809 = vrot.lane.b32.xlu0 %v805_v10, %s965_s22  ;;  %v833_v19 = vsel %vm193_vm3, %v831_v13, %v832_v14 }
 0x3c9   :  { %811 = vrot.lane.b32.xlu1 %v808_v12, %s965_s22  ;;  %v782_v20 = vpop.f32.mrb[14].mxu1  ;;  %v836_v21 = vsel %vm193_vm3, %v834_v16, %v835_v17 }
 0x3ca   :  { %v849_v28 = vrot.slane %v782_v20, 4  ;;  %v784_v4 = vpop.f32.mrb[15].mxu1  ;;  %v863_v33 = vrot.slane %v782_v20, 1  ;;  %v876_v34 = vrot.slane %v782_v20, 6 }
 0x3cb   :  { %v852_v31 = vrot.slane %v784_v4, 4  ;;  %v864_v36 = vrot.slane %v784_v4, 1  ;;  %v879_v37 = vrot.slane %v784_v4, 6 }
 0x3cc   :  { %837 = vrot.lane.b32.xlu0 %v833_v19, %s967_s23  ;;  %v850_v5 = vsel %vm422_vm12, %v848_v18, %v849_v28 }
 0x3cd   :  { %839 = vrot.lane.b32.xlu1 %v836_v21, %s967_s23  ;;  %v788_v38 = vpop.f32.mrb[16].mxu1  ;;  %v853_v40 = vsel %vm422_vm12, %v851_v30, %v852_v31 }
 0x3ce   :  { %v877_v22 = vrot.slane %v788_v38, 6  ;;  %v790_v41 = vpop.f32.mrb[17].mxu1  ;;  %v891_v35 = vrot.slane %v788_v38, 3 }
 0x3cf   :  { %v880_v42 = vrot.slane %v790_v41, 6  ;;  %v892_v39 = vrot.slane %v790_v41, 3 }
 0x3d0   :  { %865 = vrot.lane.b32.xlu0 %v863_v33, %s970_s26  ;;  %v878_v24 = vsel %vm150_vm2, %v876_v34, %v877_v22 }
 0x3d1   :  { %867 = vrot.lane.b32.xlu1 %v864_v36, %s970_s26  ;;  %v881_v32 = vsel %vm150_vm2, %v879_v37, %v880_v42  ;;  %v794_v6 = vpop.f32.mrb[18].mxu1 }
 0x3d2   :  { %v796_v23 = vpop.f32.mrb[19].mxu1 }
 0x3d4   :  { %854 = vrot.lane.b32.xlu0 %v850_v5, %s968_s24 }
 0x3d5   :  { %856 = vrot.lane.b32.xlu1 %v853_v40, %s968_s24 }
 0x3d8   :  { %893 = vrot.lane.b32.xlu0 %v891_v35, %s971_s27 }
 0x3d9   :  { %895 = vrot.lane.b32.xlu1 %v892_v39, %s971_s27 }
 0x3dc   :  { %882 = vrot.lane.b32.xlu0 %v878_v24, %s969_s25 }
 0x3dd   :  { %884 = vrot.lane.b32.xlu1 %v881_v32, %s969_s25 }
 0x3e0   :  { %904 = vrot.lane.b32.xlu0 %v794_v6, %s972_s28 }
 0x3e1   :  { %906 = vrot.lane.b32.xlu1 %v796_v23, %s972_s28 }
 0x436   :  { %v821_v43 = vpop.permute.xlu0 %820 }
 0x437   :  { %v823_v44 = vpop.permute.xlu1 %822 }
 0x438   :  { %v824_v53 = vsel %vm161_vm5, %v821_v43, %v823_v44 }
 0x43a   :  { %v810_v29 = vpop.permute.xlu0 %809 }
 0x43b   :  { %v812_v45 = vpop.permute.xlu1 %811 }
 0x43c   :  { %v813_v25 = vsel %vm142_vm4, %v810_v29, %v812_v45  ;;  %v817_v48 = vadd.f32 %v812_v45, %v1278_v62 }
 0x43d   :  { %v816_v49 = vadd.f32 %v813_v25, %v1276_v27 }
 0x43e   :  { %v838_v3 = vpop.permute.xlu0 %837  ;;  %v828_v54 = vadd.f32 %v823_v44, %v817_v48 }
 0x43f   :  { %v840_v47 = vpop.permute.xlu1 %839  ;;  %v827_v26 = vadd.f32 %v824_v53, %v816_v49 }
 0x440   :  { %v841_v55 = vsel %vm173_vm6, %v838_v3, %v840_v47  ;;  %v845_v1 = vadd.f32 %v840_v47, %v828_v54 }
 0x441   :  { %v844_v59 = vadd.f32 %v841_v55, %v827_v26 }
 0x442   :  { %v866_v50 = vpop.permute.xlu0 %865 }
 0x443   :  { %v868_v51 = vpop.permute.xlu1 %867 }
 0x444   :  { %v869_v27 = vsel %vm204_vm8, %v866_v50, %v868_v51 }
 0x446   :  { %v855_v56 = vpop.permute.xlu0 %854 }
 0x447   :  { %v857_v57 = vpop.permute.xlu1 %856 }
 0x448   :  { %v858_v58 = vsel %vm185_vm7, %v855_v56, %v857_v57  ;;  %v862_v60 = vadd.f32 %v857_v57, %v845_v1 }
 0x449   :  { %v861_v63 = vadd.f32 %v858_v58, %v844_v59 }
 0x44a   :  { %v894_v61 = vpop.permute.xlu0 %893  ;;  %v873_v2 = vadd.f32 %v868_v51, %v862_v60 }
 0x44b   :  { %v896_v62 = vpop.permute.xlu1 %895  ;;  %v872_v52 = vadd.f32 %v869_v27, %v861_v63 }
 0x44c   :  { %v897_v10 = vsel %vm228_vm10, %v894_v61, %v896_v62 }
 0x44e   :  { %v883_v0 = vpop.permute.xlu0 %882 }
 0x44f   :  { %v885_v7 = vpop.permute.xlu1 %884 }
 0x450   :  { %v886_v46 = vsel %vm216_vm9, %v883_v0, %v885_v7  ;;  %v890_v8 = vadd.f32 %v885_v7, %v873_v2 }
 0x451   :  { %v889_v9 = vadd.f32 %v886_v46, %v872_v52 }
 0x452   :  { %v905_v11 = vpop.permute.xlu0 %904  ;;  %v901_v12 = vadd.f32 %v896_v62, %v890_v8 }
 0x453   :  { %v900_v13 = vadd.f32 %v897_v10, %v889_v9  ;;  %v907_v14 = vpop.permute.xlu1 %906 }
 0x454   :  { %v908_v15 = vsel %vm240_vm11, %v905_v11, %v907_v14  ;;  %v912_v16 = vadd.f32 %v907_v14, %v901_v12 }
 0x455   :  { %v911_v17 = vadd.f32 %v908_v15, %v900_v13 }
 0x456   :  { %950 = vst.msk [vmem:[%s1326_s3 + $0x18] sm:$0x1f] %vm489_vm13, %v912_v16 }
 0x457   :  { %949 = vst [vmem:[%s1326_s3 + $0x10] sm:$0x1f] %v911_v17 }

</bundles_post_ra>
